<compile_context>
chip_gen: v6e
topology: v6e:2x2x1
jax: 0.10.0
libtpu: 0.0.40
codegen_flags: <defaults>
</compile_context>

<pallas_src>
import jax
import jax.numpy as jnp
from jax.experimental import pallas as pl
from jax.experimental.pallas import tpu as pltpu


def _round_up(n, m):
    return ((n + m - 1) // m) * m


def _mish(v):
    # mish(v) = v * tanh(softplus(v)); one exp + one approx reciprocal (both EUP slots).
    n = jnp.exp(jnp.minimum(v, 20.0))          # clamp: for v > 20, tanh(softplus(v)) == 1 in f32
    s = (1.0 + n) * (1.0 + n)
    t = (s - 1.0) * pl.reciprocal(s + 1.0, approx=True)
    return v * t


def _mlp_kernel(x_ref,
                w1_ref, b1_ref,
                w2_ref, b2_ref,
                w3_ref, b3_ref,
                w4_ref, b4_ref,
                o_ref):
    mm = w1_ref.dtype
    x = x_ref[...].astype(mm)                                              # (TB, F) f32 -> bf16 (VPU)

    h = jnp.dot(x, w1_ref[...], preferred_element_type=jnp.float32) + b1_ref[...]
    h = _mish(h)

    h = jnp.dot(h.astype(mm), w2_ref[...],
                preferred_element_type=jnp.float32) + b2_ref[...]
    h = _mish(h)

    h = jnp.dot(h.astype(mm), w3_ref[...],
                preferred_element_type=jnp.float32) + b3_ref[...]
    h = _mish(h)

    # Layer 4 (single output unit): VPU multiply + cross-lane reduce in f32 instead of a
    # pathologically narrow (N=1) MXU matmul.
    out = jnp.sum(h * w4_ref[...], axis=-1, keepdims=True) + b4_ref[0, 0]  # scalar bias (SMEM)
    o_ref[...] = out.astype(o_ref.dtype)


def prepare_params(params, matmul_dtype=jnp.bfloat16):
    """One-time conversion of PyTorch-style params: (out,in) -> (in,out), bf16 matmul
    operands for layers 1-3, f32 biases. Layer 4 stays f32 (VPU path). Do this once,
    outside the per-call path."""
    (w1, b1), (w2, b2), (w3, b3), (w4, b4) = params
    return (
        w1.T.astype(matmul_dtype), b1.reshape(1, -1).astype(jnp.float32),
        w2.T.astype(matmul_dtype), b2.reshape(1, -1).astype(jnp.float32),
        w3.T.astype(matmul_dtype), b3.reshape(1, -1).astype(jnp.float32),
        w4.reshape(1, -1).astype(jnp.float32),      # (1, layer_out) row, f32
        b4.reshape(1, 1).astype(jnp.float32),       # scalar -> SMEM
    )


def fnn_classifier_tri3(x, prepared_params, *, max_batch_tile=2048):
    """Fused forward pass. x: [B, input_size] float32. Returns [B, 1] float32."""
    w1, b1, w2, b2, w3, b3, w4, b4 = prepared_params
    B, F = x.shape
    assert max_batch_tile % 8 == 0, "batch tile must be a multiple of 8 sublanes"

    tb = min(max_batch_tile, _round_up(B, 8))
    b_pad = _round_up(B, tb)
    if b_pad != B:                               # pad only when the tile doesn't divide B
        x = jnp.pad(x, ((0, b_pad - B), (0, 0)))

    grid = (b_pad // tb,)

    out = pl.pallas_call(
        _mlp_kernel,
        out_shape=jax.ShapeDtypeStruct((b_pad, 1), jnp.float32),
        grid=grid,
        in_specs=[
            pl.BlockSpec((tb, F), lambda i: (i, 0)),            # x: batch-tiled, pipelined
            pl.BlockSpec(w1.shape, lambda i: (0, 0)),            # weights/biases: VMEM-resident
            pl.BlockSpec(b1.shape, lambda i: (0, 0)),
            pl.BlockSpec(w2.shape, lambda i: (0, 0)),
            pl.BlockSpec(b2.shape, lambda i: (0, 0)),
            pl.BlockSpec(w3.shape, lambda i: (0, 0)),
            pl.BlockSpec(b3.shape, lambda i: (0, 0)),
            pl.BlockSpec(w4.shape, lambda i: (0, 0)),
            pl.BlockSpec(memory_space=pltpu.MemorySpace.SMEM),   # b4: scalar in SMEM
        ],
        out_specs=pl.BlockSpec((tb, 1), lambda i: (i, 0)),
        compiler_params=pltpu.CompilerParams(
            dimension_semantics=("parallel",)),                  # megacore sharding
    )(x, w1, b1, w2, b2, w3, b3, w4, b4)

    return out[:B] if b_pad != B else out


def init_params(key, input_size, layer_output_size):
    """Deterministic init matching nn.Linear shapes (weight: (out, in), bias: (out,))."""
    dims = [
        (layer_output_size, input_size),
        (layer_output_size * 2, layer_output_size),
        (layer_output_size, layer_output_size * 2),
        (1, layer_output_size),
    ]
    params = []
    for i, (fan_out, fan_in) in enumerate(dims):
        kw, kb = jax.random.split(jax.random.fold_in(key, i))
        bound = 1.0 / jnp.sqrt(fan_in)
        w = jax.random.uniform(kw, (fan_out, fan_in), jnp.float32, -bound, bound)
        b = jax.random.uniform(kb, (fan_out,), jnp.float32, -bound, bound)
        params.append((w, b))
    return params


def _reference(x, params, matmul_dtype=jnp.bfloat16):
    """Plain-JAX reference with the same precision policy (bf16 matmul operands for
    layers 1-3, f32 accumulation, exact mish, f32 final layer)."""
    (w1, b1), (w2, b2), (w3, b3), (w4, b4) = params
    h = x
    for w, b in ((w1, b1), (w2, b2), (w3, b3)):
        h = jnp.dot(h.astype(matmul_dtype), w.T.astype(matmul_dtype),
                    preferred_element_type=jnp.float32) + b
        h = h * jnp.tanh(jax.nn.softplus(h))
    return jnp.dot(h, w4.T) + b4


if __name__ == "__main__":
    key = jax.random.PRNGKey(0)
    input_size = 32
    layer_output_size = 32
    batch = 20   # deliberately not a multiple of the tile: exercises grid + remainder path

    kx, kp = jax.random.split(key)
    x = jax.random.normal(kx, (batch, input_size), jnp.float32)
    params = init_params(kp, input_size, layer_output_size)
    prepared = prepare_params(params)

    fwd = jax.jit(fnn_classifier_tri3, static_argnames=("max_batch_tile",))
    out = fwd(x, prepared, max_batch_tile=8)   # small tile -> grid=(3,) for the test
    out = jax.block_until_ready(out)

    ref = _reference(x, params)
    assert out.shape == (batch, 1), out.shape
    assert jnp.allclose(out, ref, atol=2e-2, rtol=2e-2), (out, ref)

    print("KERNEL_OK")
</pallas_src>

<mosaic_0001>
module attributes {stable_mosaic.version = 11 : i64} {
  func.func @_mlp_kernel(%arg0: i32, %arg1: memref<8x32xf32, #tpu.memory_space<vmem>>, %arg2: memref<32x32xbf16, #tpu.memory_space<vmem>>, %arg3: memref<1x32xf32, #tpu.memory_space<vmem>>, %arg4: memref<32x64xbf16, #tpu.memory_space<vmem>>, %arg5: memref<1x64xf32, #tpu.memory_space<vmem>>, %arg6: memref<64x32xbf16, #tpu.memory_space<vmem>>, %arg7: memref<1x32xf32, #tpu.memory_space<vmem>>, %arg8: memref<1x32xf32, #tpu.memory_space<vmem>>, %arg9: memref<1x1xf32, #tpu.memory_space<smem>>, %arg10: memref<8x1xf32, #tpu.memory_space<vmem>>) attributes {dimension_semantics = [#tpu.dimension_semantics<parallel>], iteration_bounds = array<i64: 3>, scalar_prefetch = 0 : i64, scratch_operands = 0 : i64, tpu.core_type = #tpu.core_type<tc>, window_params = [{transform_indices = @transform_0, window_bounds = array<i64: 8, 32>}, {pipeline_mode = #tpu.pipeline_mode<synchronous>, transform_indices = @transform_1, window_bounds = array<i64: 32, 32>}, {pipeline_mode = #tpu.pipeline_mode<synchronous>, transform_indices = @transform_2, window_bounds = array<i64: 1, 32>}, {pipeline_mode = #tpu.pipeline_mode<synchronous>, transform_indices = @transform_3, window_bounds = array<i64: 32, 64>}, {pipeline_mode = #tpu.pipeline_mode<synchronous>, transform_indices = @transform_4, window_bounds = array<i64: 1, 64>}, {pipeline_mode = #tpu.pipeline_mode<synchronous>, transform_indices = @transform_5, window_bounds = array<i64: 64, 32>}, {pipeline_mode = #tpu.pipeline_mode<synchronous>, transform_indices = @transform_6, window_bounds = array<i64: 1, 32>}, {pipeline_mode = #tpu.pipeline_mode<synchronous>, transform_indices = @transform_7, window_bounds = array<i64: 1, 32>}, {transform_indices = @transform_8, window_bounds = array<i64: 1, 1>}, {transform_indices = @transform_9, window_bounds = array<i64: 8, 1>}]} {
    %c0 = arith.constant 0 : index
    %c0_0 = arith.constant 0 : index
    %0 = vector.load %arg1[%c0, %c0_0] : memref<8x32xf32, #tpu.memory_space<vmem>>, vector<8x32xf32>
    %1 = arith.truncf %0 : vector<8x32xf32> to vector<8x32xbf16>
    %c0_1 = arith.constant 0 : index
    %c0_2 = arith.constant 0 : index
    %2 = vector.load %arg2[%c0_1, %c0_2] : memref<32x32xbf16, #tpu.memory_space<vmem>>, vector<32x32xbf16>
    %cst = arith.constant dense<0.000000e+00> : vector<8x32xf32>
    %3 = tpu.matmul %1, %2, %cst {dimension_numbers = #tpu.dot_dimension_numbers<[1], [0], [0], [1], [0, 0, 1, 1], [], []>} : vector<8x32xbf16>, vector<32x32xbf16>, vector<8x32xf32> -> vector<8x32xf32>
    %c0_3 = arith.constant 0 : index
    %c0_4 = arith.constant 0 : index
    %4 = vector.load %arg3[%c0_3, %c0_4] : memref<1x32xf32, #tpu.memory_space<vmem>>, vector<1x32xf32>
    %5 = vector.broadcast %4 : vector<1x32xf32> to vector<8x32xf32>
    %6 = arith.addf %3, %5 : vector<8x32xf32>
    %cst_5 = arith.constant 2.000000e+01 : f32
    %7 = vector.broadcast %cst_5 : f32 to vector<8x32xf32>
    %8 = arith.minimumf %6, %7 : vector<8x32xf32>
    %9 = math.exp %8 : vector<8x32xf32>
    %cst_6 = arith.constant 1.000000e+00 : f32
    %10 = vector.broadcast %cst_6 : f32 to vector<8x32xf32>
    %11 = arith.addf %10, %9 : vector<8x32xf32>
    %cst_7 = arith.constant 1.000000e+00 : f32
    %12 = vector.broadcast %cst_7 : f32 to vector<8x32xf32>
    %13 = arith.addf %12, %9 : vector<8x32xf32>
    %14 = arith.mulf %11, %13 : vector<8x32xf32>
    %cst_8 = arith.constant 1.000000e+00 : f32
    %15 = vector.broadcast %cst_8 : f32 to vector<8x32xf32>
    %16 = arith.subf %14, %15 : vector<8x32xf32>
    %cst_9 = arith.constant 1.000000e+00 : f32
    %17 = vector.broadcast %cst_9 : f32 to vector<8x32xf32>
    %18 = arith.addf %14, %17 : vector<8x32xf32>
    %19 = tpu.reciprocal %18 {approx = true} : vector<8x32xf32> -> vector<8x32xf32>
    %20 = arith.mulf %16, %19 : vector<8x32xf32>
    %21 = arith.mulf %6, %20 : vector<8x32xf32>
    %22 = arith.truncf %21 : vector<8x32xf32> to vector<8x32xbf16>
    %c0_10 = arith.constant 0 : index
    %c0_11 = arith.constant 0 : index
    %23 = vector.load %arg4[%c0_10, %c0_11] : memref<32x64xbf16, #tpu.memory_space<vmem>>, vector<32x64xbf16>
    %cst_12 = arith.constant dense<0.000000e+00> : vector<8x64xf32>
    %24 = tpu.matmul %22, %23, %cst_12 {dimension_numbers = #tpu.dot_dimension_numbers<[1], [0], [0], [1], [0, 0, 1, 1], [], []>} : vector<8x32xbf16>, vector<32x64xbf16>, vector<8x64xf32> -> vector<8x64xf32>
    %c0_13 = arith.constant 0 : index
    %c0_14 = arith.constant 0 : index
    %25 = vector.load %arg5[%c0_13, %c0_14] : memref<1x64xf32, #tpu.memory_space<vmem>>, vector<1x64xf32>
    %26 = vector.broadcast %25 : vector<1x64xf32> to vector<8x64xf32>
    %27 = arith.addf %24, %26 : vector<8x64xf32>
    %cst_15 = arith.constant 2.000000e+01 : f32
    %28 = vector.broadcast %cst_15 : f32 to vector<8x64xf32>
    %29 = arith.minimumf %27, %28 : vector<8x64xf32>
    %30 = math.exp %29 : vector<8x64xf32>
    %cst_16 = arith.constant 1.000000e+00 : f32
    %31 = vector.broadcast %cst_16 : f32 to vector<8x64xf32>
    %32 = arith.addf %31, %30 : vector<8x64xf32>
    %cst_17 = arith.constant 1.000000e+00 : f32
    %33 = vector.broadcast %cst_17 : f32 to vector<8x64xf32>
    %34 = arith.addf %33, %30 : vector<8x64xf32>
    %35 = arith.mulf %32, %34 : vector<8x64xf32>
    %cst_18 = arith.constant 1.000000e+00 : f32
    %36 = vector.broadcast %cst_18 : f32 to vector<8x64xf32>
    %37 = arith.subf %35, %36 : vector<8x64xf32>
    %cst_19 = arith.constant 1.000000e+00 : f32
    %38 = vector.broadcast %cst_19 : f32 to vector<8x64xf32>
    %39 = arith.addf %35, %38 : vector<8x64xf32>
    %40 = tpu.reciprocal %39 {approx = true} : vector<8x64xf32> -> vector<8x64xf32>
    %41 = arith.mulf %37, %40 : vector<8x64xf32>
    %42 = arith.mulf %27, %41 : vector<8x64xf32>
    %43 = arith.truncf %42 : vector<8x64xf32> to vector<8x64xbf16>
    %c0_20 = arith.constant 0 : index
    %c0_21 = arith.constant 0 : index
    %44 = vector.load %arg6[%c0_20, %c0_21] : memref<64x32xbf16, #tpu.memory_space<vmem>>, vector<64x32xbf16>
    %cst_22 = arith.constant dense<0.000000e+00> : vector<8x32xf32>
    %45 = tpu.matmul %43, %44, %cst_22 {dimension_numbers = #tpu.dot_dimension_numbers<[1], [0], [0], [1], [0, 0, 1, 1], [], []>} : vector<8x64xbf16>, vector<64x32xbf16>, vector<8x32xf32> -> vector<8x32xf32>
    %c0_23 = arith.constant 0 : index
    %c0_24 = arith.constant 0 : index
    %46 = vector.load %arg7[%c0_23, %c0_24] : memref<1x32xf32, #tpu.memory_space<vmem>>, vector<1x32xf32>
    %47 = vector.broadcast %46 : vector<1x32xf32> to vector<8x32xf32>
    %48 = arith.addf %45, %47 : vector<8x32xf32>
    %cst_25 = arith.constant 2.000000e+01 : f32
    %49 = vector.broadcast %cst_25 : f32 to vector<8x32xf32>
    %50 = arith.minimumf %48, %49 : vector<8x32xf32>
    %51 = math.exp %50 : vector<8x32xf32>
    %cst_26 = arith.constant 1.000000e+00 : f32
    %52 = vector.broadcast %cst_26 : f32 to vector<8x32xf32>
    %53 = arith.addf %52, %51 : vector<8x32xf32>
    %cst_27 = arith.constant 1.000000e+00 : f32
    %54 = vector.broadcast %cst_27 : f32 to vector<8x32xf32>
    %55 = arith.addf %54, %51 : vector<8x32xf32>
    %56 = arith.mulf %53, %55 : vector<8x32xf32>
    %cst_28 = arith.constant 1.000000e+00 : f32
    %57 = vector.broadcast %cst_28 : f32 to vector<8x32xf32>
    %58 = arith.subf %56, %57 : vector<8x32xf32>
    %cst_29 = arith.constant 1.000000e+00 : f32
    %59 = vector.broadcast %cst_29 : f32 to vector<8x32xf32>
    %60 = arith.addf %56, %59 : vector<8x32xf32>
    %61 = tpu.reciprocal %60 {approx = true} : vector<8x32xf32> -> vector<8x32xf32>
    %62 = arith.mulf %58, %61 : vector<8x32xf32>
    %63 = arith.mulf %48, %62 : vector<8x32xf32>
    %c0_30 = arith.constant 0 : index
    %c0_31 = arith.constant 0 : index
    %64 = vector.load %arg8[%c0_30, %c0_31] : memref<1x32xf32, #tpu.memory_space<vmem>>, vector<1x32xf32>
    %65 = vector.broadcast %64 : vector<1x32xf32> to vector<8x32xf32>
    %66 = arith.mulf %63, %65 : vector<8x32xf32>
    %cst_32 = arith.constant dense<0.000000e+00> : vector<8xf32>
    %67 = vector.multi_reduction <add>, %66, %cst_32 [1] : vector<8x32xf32> to vector<8xf32>
    %68 = vector.shape_cast %67 : vector<8xf32> to vector<8x1xf32>
    %c0_33 = arith.constant 0 : index
    %c0_34 = arith.constant 0 : index
    %69 = memref.load %arg9[%c0_33, %c0_34] : memref<1x1xf32, #tpu.memory_space<smem>>
    %70 = vector.broadcast %69 : f32 to vector<8x1xf32>
    %71 = arith.addf %68, %70 : vector<8x1xf32>
    %c0_35 = arith.constant 0 : index
    %c0_36 = arith.constant 0 : index
    %72 = vector.load %arg10[%c0_35, %c0_36] : memref<8x1xf32, #tpu.memory_space<vmem>>, vector<8x1xf32>
    tpu.vector_store %arg10[%c0_35, %c0_36], %71 {strides = array<i32>} : memref<8x1xf32, #tpu.memory_space<vmem>>, vector<8x1xf32>,
    return
  }
  func.func @transform_0(%arg0: i32) -> (i32, i32) {
    %c0_i32 = arith.constant 0 : i32
    %c0_i32_0 = arith.constant 0 : i32
    return %arg0, %c0_i32 : i32, i32
  }
  func.func @transform_1(%arg0: i32) -> (i32, i32) {
    %c0_i32 = arith.constant 0 : i32
    %c0_i32_0 = arith.constant 0 : i32
    %c0_i32_1 = arith.constant 0 : i32
    return %c0_i32, %c0_i32_0 : i32, i32
  }
  func.func @transform_2(%arg0: i32) -> (i32, i32) {
    %c0_i32 = arith.constant 0 : i32
    %c0_i32_0 = arith.constant 0 : i32
    %c0_i32_1 = arith.constant 0 : i32
    return %c0_i32, %c0_i32_0 : i32, i32
  }
  func.func @transform_3(%arg0: i32) -> (i32, i32) {
    %c0_i32 = arith.constant 0 : i32
    %c0_i32_0 = arith.constant 0 : i32
    %c0_i32_1 = arith.constant 0 : i32
    return %c0_i32, %c0_i32_0 : i32, i32
  }
  func.func @transform_4(%arg0: i32) -> (i32, i32) {
    %c0_i32 = arith.constant 0 : i32
    %c0_i32_0 = arith.constant 0 : i32
    %c0_i32_1 = arith.constant 0 : i32
    return %c0_i32, %c0_i32_0 : i32, i32
  }
  func.func @transform_5(%arg0: i32) -> (i32, i32) {
    %c0_i32 = arith.constant 0 : i32
    %c0_i32_0 = arith.constant 0 : i32
    %c0_i32_1 = arith.constant 0 : i32
    return %c0_i32, %c0_i32_0 : i32, i32
  }
  func.func @transform_6(%arg0: i32) -> (i32, i32) {
    %c0_i32 = arith.constant 0 : i32
    %c0_i32_0 = arith.constant 0 : i32
    %c0_i32_1 = arith.constant 0 : i32
    return %c0_i32, %c0_i32_0 : i32, i32
  }
  func.func @transform_7(%arg0: i32) -> (i32, i32) {
    %c0_i32 = arith.constant 0 : i32
    %c0_i32_0 = arith.constant 0 : i32
    %c0_i32_1 = arith.constant 0 : i32
    return %c0_i32, %c0_i32_0 : i32, i32
  }
  func.func @transform_8(%arg0: i32) -> (i32, i32) {
    %c0_i32 = arith.constant 0 : i32
    %c0_i32_0 = arith.constant 0 : i32
    %c0_i32_1 = arith.constant 0 : i32
    return %c0_i32, %c0_i32_0 : i32, i32
  }
  func.func @transform_9(%arg0: i32) -> (i32, i32) {
    %c0_i32 = arith.constant 0 : i32
    %c0_i32_0 = arith.constant 0 : i32
    return %arg0, %c0_i32 : i32, i32
  }
}

</mosaic_0001>

<bundles_post_ra>
// kernel: fnn_classifier_tri3.1
= control target key start
LH: loop header
LB: loop body
LE: loop exit
PB: predicated region body
PF: predicated region fallthrough
CT: control target
= control target key end

     0   :  { %s808_s11 = smov 0   ;;  %s871_s0 = inlined_call_operand.vmem [shape: f32[24,32], index: 0, kind: input, shape index: {}]   ;;  %s872_s1 = inlined_call_operand.vmem [shape: bf16[32,32], index: 1, kind: input, shape index: {}]   ;;  %s873_s2 = inlined_call_operand.vmem [shape: f32[1,32], index: 2, kind: input, shape index: {}]   ;;  %s874_s3 = inlined_call_operand.vmem [shape: bf16[32,64], index: 3, kind: input, shape index: {}]   ;;  %s875_s4 = inlined_call_operand.vmem [shape: f32[1,64], index: 4, kind: input, shape index: {}]   ;;  %s876_s5 = inlined_call_operand.vmem [shape: bf16[64,32], index: 5, kind: input, shape index: {}]   ;;  %s877_s6 = inlined_call_operand.vmem [shape: f32[1,32], index: 6, kind: input, shape index: {}]   ;;  %s878_s7 = inlined_call_operand.vmem [shape: f32[1,32], index: 7, kind: input, shape index: {}]   ;;  %s879_s8 = inlined_call_operand.<no memory space> [shape: f32[1,1], index: 8, kind: input, shape index: {}]   ;;  %s880_s9 = inlined_call_operand.vmem [shape: f32[24,1], index: 9, kind: output, shape index: {}]  }
   0x1   :  { %14 = sst [smem:[#allocation2]] %s879_s8 }
   0x2 LB: > { %s649_s12 = sadd.s32 4294967295, %s751_s11   ;;  %p653_p0 = scmp.ge.s32.totalorder %s751_s11, 1  ;;  %s751_s11 = sphi %s808_s11, %s20_s11  }
   0x3   : > { %p287_p1 = scmp.lt.s32.totalorder %s751_s11, 4 }
   0x5   : > { %p288_p2 = pnand %p653_p0, %p287_p1 }
   0x6   : > { %p321_p3 = scmp.lt.s32.totalorder (!%p288_p2), %s649_s12, 2  ;;  %s591_s21 = sld [smem:[#allocation2]] (!%p288_p2) }
   0x7   : > { %291 = sbr.rel (%p288_p2) target bundleno = 880 (0x370), region = 56 }
   0xc   : > { %v725_v0 = vld [vmem:[%s872_s1 + $0x8] sm:$0xff]   ;;  %v753_v1 = vmov 0.0   ;;  %v726_v2 = vld [vmem:[%s872_s1] sm:$0xff]   ;;  %vm754_vm0 = vmmov 0   ;;  %s882_s12 = smov (!%p321_p3, %s649_s12), 2  ;;  %vm355_vm1 = vcmask 261120  }
   0xd   : > { %687 = vmatprep.subr.bf16.mxu1 %v753_v1  ;;  %703 = vmatprep.subr.bf16.mxu0 %v753_v1  ;;  %s654_s16 = sshll.u32 %s882_s12, 3  ;;  %v727_v5 = vld [vmem:[%s874_s3 + $0x8] sm:$0xff]   ;;  %v728_v6 = vld [vmem:[%s874_s3] sm:$0xff]   ;;  %v729_v24 = vld [vmem:[%s876_s5 + $0x18] sm:$0xff]   ;;  %vm526_vm2 = vcmask 523264   ;;  %vm594_vm3 = vcmask 7168  }
   0xe   : > { %688 = vmatpush3.bf16.msra.mxu1 %v725_v0  ;;  %691 = vmatprep.mubr.msk.bf16.mxu1 %vm754_vm0, %v753_v1  ;;  %s324_s19 = scalar_lea.vmem %s871_s0, %s654_s16  ;;  %v656_v7 = vld [vmem:[%s873_s2] ss:$0 sm:$0xff]  ;;  %v730_v25 = vld [vmem:[%s876_s5 + $0x10] sm:$0xff]   ;;  %v731_v26 = vld [vmem:[%s876_s5 + $0x8] sm:$0xff]   ;;  %v592_v0 = vstv %s591_s21  ;;  %s328_s24 = scalar_lea.vmem %s880_s9, %s654_s16 }
   0xf   : > { %689 = vmatprep.subr.bf16.mxu1 %v753_v1  ;;  %711 = vmatprep.mubr.msk.bf16.mxu0 %vm754_vm0, %v753_v1  ;;  %v330_v3 = vld [vmem:[%s324_s19] sm:$0xff] }
  0x10   : > { %v331_v4 = vpack.c.bf16 %v330_v3, %v330_v3  ;;  %704 = vmatpush3.bf16.msra.mxu0 %v729_v24  ;;  %v732_v27 = vld [vmem:[%s876_s5] sm:$0xff]  }
  0x11   : > { %705 = vmatprep.subr.bf16.mxu0 %v753_v1  ;;  %v661_v28 = vld [vmem:[%s875_s4] ss:$0 sm:$0xff] }
  0x12   : > { %690 = vmatpush3.bf16.msra.mxu1 %v726_v2  ;;  %v666_v45 = vld [vmem:[%s877_s6] ss:$0 sm:$0xff] }
  0x13   : > { %695 = vmatprep.subr.bf16.mxu1 %v753_v1  ;;  %v673_v60 = vld [vmem:[%s878_s7] ss:$0 sm:$0xff] }
  0x14   : > { %706 = vmatpush3.bf16.msra.mxu0 %v730_v25 }
  0x15   : > { %692 = vmatmul.mubr.msk.bf16.vlgmr.msra.gmra.mxu1 %vm355_vm1, %v331_v4  ;;  %707 = vmatprep.subr.bf16.mxu0 %v753_v1 }
  0x16   : > { %699 = vmatprep.mubr.msk.bf16.mxu1 %vm754_vm0, %v753_v1  ;;  %696 = vmatpush3.bf16.msra.mxu1 %v727_v5 }
  0x17   : > { %697 = vmatprep.subr.bf16.mxu1 %v753_v1 }
  0x18   : > { %708 = vmatpush3.bf16.msra.mxu0 %v731_v26 }
  0x19   : > { %709 = vmatprep.subr.bf16.mxu0 %v753_v1 }
  0x1a   : > { %698 = vmatpush3.bf16.msra.mxu1 %v728_v6 }
  0x1c   : > { %710 = vmatpush3.bf16.msra.mxu0 %v732_v27 }
  0xd5   : > { %v393_v8 = vpop.f32.mrf.mxu1 }
  0xd6   : > { %v394_v9 = vadd.f32 %v656_v7, %v393_v8 }
  0xd7   : > { %v693_v10 = vpop.f32.mrf.mxu1 }
  0xd8   : > { %v399_v11 = vmin.f32 %v394_v9, 20.0 }
  0xd9   : > { %v396_v12 = vpop.f32.mrf.mxu1 }
  0xda   : > { %v400_v13 = vmul.f32 1.442695, %v399_v11 }
  0xdb   : > { %v694_v14 = vpop.f32.mrf.mxu1 }
  0xdc   : > { %733 = vpow2.f32 %v400_v13 }
  0xe9   : > { %v734_v15 = vpop.eup %733 }
  0xea   : > { %v402_v16 = vadd.f32 1.0, %v734_v15 }
  0xec   : > { %v403_v17 = vmul.f32 %v402_v16, %v402_v16 }
  0xee   : > { %v405_v18 = vadd.f32 1.0, %v403_v17  ;;  %v660_v19 = vadd.f32 -1.0, %v403_v17 }
  0xf0   : > { %735 = vrcp.f32 %v405_v18 }
  0xfd   : > { %v736_v20 = vpop.eup %735 }
  0xfe   : > { %v407_v21 = vmul.f32 %v736_v20, %v660_v19 }
 0x100   : > { %v408_v22 = vmul.f32 %v407_v21, %v394_v9 }
 0x102   : > { %v409_v23 = vpack.c.bf16 %v408_v22, %v408_v22 }
 0x104   : > { %700 = vmatmul.mubr.msk.bf16.vlgmr.msra.gmra.mxu1 %vm355_vm1, %v409_v23 }
 0x1c4   : > { %v470_v29 = vpop.f32.mrf.mxu1 }
 0x1c5   : > { %v471_v30 = vadd.f32 %v661_v28, %v470_v29 }
 0x1c6   : > { %v701_v31 = vpop.f32.mrf.mxu1 }
 0x1c7   : > { %v476_v32 = vmin.f32 %v471_v30, 20.0 }
 0x1c8   : > { %v473_v33 = vpop.f32.mrf.mxu1 }
 0x1c9   : > { %v477_v34 = vmul.f32 1.442695, %v476_v32 }
 0x1ca   : > { %v702_v35 = vpop.f32.mrf.mxu1 }
 0x1cb   : > { %737 = vpow2.f32 %v477_v34 }
 0x1d8   : > { %v738_v36 = vpop.eup %737 }
 0x1d9   : > { %v479_v37 = vadd.f32 1.0, %v738_v36 }
 0x1db   : > { %v480_v38 = vmul.f32 %v479_v37, %v479_v37 }
 0x1dd   : > { %v482_v39 = vadd.f32 1.0, %v480_v38  ;;  %v665_v40 = vadd.f32 -1.0, %v480_v38 }
 0x1df   : > { %739 = vrcp.f32 %v482_v39 }
 0x1ec   : > { %v740_v41 = vpop.eup %739 }
 0x1ed   : > { %v484_v42 = vmul.f32 %v740_v41, %v665_v40 }
 0x1ef   : > { %v485_v43 = vmul.f32 %v484_v42, %v471_v30 }
 0x1f1   : > { %v486_v44 = vpack.c.bf16 %v485_v43, %v485_v43 }
 0x1f3   : > { %712 = vmatmul.mubr.msk.bf16.vlgmr.msra.gmra.mxu0 %vm526_vm2, %v486_v44 }
 0x2b3   : > { %v564_v46 = vpop.f32.mrf.mxu0 }
 0x2b4   : > { %v565_v47 = vadd.f32 %v666_v45, %v564_v46 }
 0x2b5   : > { %v713_v48 = vpop.f32.mrf.mxu0 }
 0x2b6   : > { %v570_v49 = vmin.f32 %v565_v47, 20.0 }
 0x2b7   : > { %v567_v50 = vpop.f32.mrf.mxu0 }
 0x2b8   : > { %v571_v51 = vmul.f32 1.442695, %v570_v49 }
 0x2b9   : > { %v714_v52 = vpop.f32.mrf.mxu0 }
 0x2ba   : > { %741 = vpow2.f32 %v571_v51 }
 0x2c7   : > { %v742_v53 = vpop.eup %741 }
 0x2c8   : > { %v573_v54 = vadd.f32 1.0, %v742_v53 }
 0x2ca   : > { %v574_v55 = vmul.f32 %v573_v54, %v573_v54 }
 0x2cc   : > { %v576_v56 = vadd.f32 1.0, %v574_v55  ;;  %v672_v57 = vadd.f32 -1.0, %v574_v55 }
 0x2ce   : > { %743 = vrcp.f32 %v576_v56 }
 0x2db   : > { %v744_v58 = vpop.eup %743 }
 0x2dc   : > { %v578_v59 = vmul.f32 %v744_v58, %v672_v57 }
 0x2de   : > { %v579_v61 = vmul.f32 %v578_v59, %v565_v47 }
 0x2e0   : > { %v587_v62 = vmul.f32 %v673_v60, %v579_v61 }
 0x2e2   : > { %v588_v63 = vsel %vm355_vm1, %v587_v62, 0.0 }
 0x2e3   : > { %589 = vadd.xlane.f32.xlu0 %v588_v63 }
 0x36c   : > { %v590_v1 = vpop.xlane.xlu0 %589 }
 0x36d   : > { %v593_v2 = vadd.f32 %v592_v0, %v590_v1 }
 0x36f   : > { %595 = vst.msk [vmem:[%s328_s24] sm:$0xff] %vm594_vm3, %v593_v2 }
 0x370 PF: > { %s20_s11 = sadd.s32 1, %s751_s11  }
 0x371   : > { %p17_p4 = scmp.ge.s32.totalorder %s20_s11, 5  }
 0x373   :  { %19 = sbr.rel (!%p17_p4) target bundleno = 2 (0x2), region = 86 }

</bundles_post_ra>
